<compile_context>
chip_gen: v6e
topology: v6e:2x2x1
jax: 0.10.0
libtpu: 0.0.40
codegen_flags: <defaults>
</compile_context>

<pallas_src>
import functools

import jax
import jax.numpy as jnp
from jax.experimental import pallas as pl
from jax.experimental.pallas import tpu as pltpu


def _linear_kernel(x_ref, w_ref, b_ref, o_ref):
    # x_ref: (tm, 3)  w_ref: (3, in_dim)  b_ref: (1, in_dim)  o_ref: (tm, in_dim)
    acc = jnp.dot(x_ref[...], w_ref[...], preferred_element_type=jnp.float32)
    o_ref[...] = (acc + b_ref[...]).astype(o_ref.dtype)


# Scoped-VMEM request: above the default scoped limits (16 MiB v5e / 32 MiB v6e, v7x)
# but comfortably below v7x's 64 MiB physical VMEM per TensorCore.
_VMEM_LIMIT_BYTES = 48 * 1024 * 1024
# Budget for the double-buffered per-step tiles (leaves headroom under the limit).
_TILE_BUDGET_BYTES = 24 * 1024 * 1024


def _choose_tm(M, in_dim, itemsize):
    """Largest sublane-aligned row tile whose double-buffered tiles fit the budget."""
    # Per row: 2x input tile (tm, 3) + 2x output tile (tm, in_dim), double-buffered.
    bytes_per_row = 2 * 3 * itemsize + 2 * in_dim * itemsize
    tm = _TILE_BUDGET_BYTES // bytes_per_row
    tm = min(int(tm), 4096)           # diminishing returns past a few thousand rows
    tm = (tm // 8) * 8                # sublane alignment
    tm = max(tm, 8)
    # No point tiling wider than the (sublane-rounded) total number of rows.
    tm = min(tm, ((M + 7) // 8) * 8)
    return int(tm)


@functools.partial(jax.jit, static_argnames=("tm",))
def positional_encoding(x, weight, bias, *, tm=None):
    """x: (B, N, 3), weight: (3, in_dim), bias: (in_dim,) -> (B, N, in_dim)."""
    B, N, K = x.shape
    assert K == 3, "point clouds must have xyz coordinates"
    in_dim = weight.shape[1]

    # Flatten (B, N) into a single row axis; the linear layer is pointwise.
    M = B * N
    x_flat = x.reshape(M, K)
    bias2d = bias.reshape(1, in_dim)

    if tm is None:
        tm = _choose_tm(M, in_dim, jnp.dtype(x.dtype).itemsize)
    assert tm % 8 == 0, f"tm must be sublane-aligned (multiple of 8), got {tm}"

    # No padding / slicing: the trailing partial block (if M % tm != 0) is handled
    # by Pallas (OOB reads padded, OOB writes masked); rows are independent so the
    # padded rows cannot corrupt valid output rows.
    grid = (pl.cdiv(M, tm),)

    out_flat = pl.pallas_call(
        _linear_kernel,
        out_shape=jax.ShapeDtypeStruct((M, in_dim), x.dtype),
        grid_spec=pltpu.PrefetchScalarGridSpec(
            num_scalar_prefetch=0,
            grid=grid,
            in_specs=[
                pl.BlockSpec((tm, K), lambda i: (i, 0)),       # x tile
                pl.BlockSpec((K, in_dim), lambda i: (0, 0)),   # full weight (resident)
                pl.BlockSpec((1, in_dim), lambda i: (0, 0)),   # bias row (resident)
            ],
            out_specs=pl.BlockSpec((tm, in_dim), lambda i: (i, 0)),
        ),
        compiler_params=pltpu.CompilerParams(
            dimension_semantics=("parallel",),
            vmem_limit_bytes=_VMEM_LIMIT_BYTES,
        ),
    )(x_flat, weight, bias2d)

    return out_flat.reshape(B, N, in_dim)


if __name__ == "__main__":
    key = jax.random.PRNGKey(0)
    k_x, k_w, k_b = jax.random.split(key, 3)

    batch, num_points, in_dim = 2, 16, 32

    # Deterministic parameter init (matching nn.Linear's U(-1/sqrt(fan_in), 1/sqrt(fan_in))).
    bound = 1.0 / jnp.sqrt(3.0)
    weight = jax.random.uniform(k_w, (3, in_dim), jnp.float32, -bound, bound)
    bias = jax.random.uniform(k_b, (in_dim,), jnp.float32, -bound, bound)

    x = jax.random.normal(k_x, (batch, num_points, 3), jnp.float32)

    out = positional_encoding(x, weight, bias)
    out = jax.block_until_ready(out)

    # Sanity check against plain-JAX reference.
    ref = jnp.einsum("bnk,kd->bnd", x, weight) + bias
    assert out.shape == (batch, num_points, in_dim)
    assert jnp.allclose(out, ref, atol=1e-5, rtol=1e-5)

    # Extra check: non-divisible row count exercises the masked trailing block.
    x2 = jax.random.normal(k_x, (3, 37, 3), jnp.float32)
    out2 = jax.block_until_ready(positional_encoding(x2, weight, bias))
    ref2 = jnp.einsum("bnk,kd->bnd", x2, weight) + bias
    assert jnp.allclose(out2, ref2, atol=1e-5, rtol=1e-5)

    print("KERNEL_OK")
</pallas_src>

<mosaic_0001>
module attributes {stable_mosaic.version = 11 : i64} {
  func.func @_linear_kernel(%arg0: i32, %arg1: memref<32x3xf32, #tpu.memory_space<vmem>>, %arg2: memref<3x32xf32, #tpu.memory_space<vmem>>, %arg3: memref<1x32xf32, #tpu.memory_space<vmem>>, %arg4: memref<32x32xf32, #tpu.memory_space<vmem>>) attributes {dimension_semantics = [#tpu.dimension_semantics<parallel>], iteration_bounds = array<i64: 1>, scalar_prefetch = 0 : i64, scratch_operands = 0 : i64, tpu.core_type = #tpu.core_type<tc>, window_params = [{transform_indices = @transform_0, window_bounds = array<i64: 32, 3>}, {pipeline_mode = #tpu.pipeline_mode<synchronous>, transform_indices = @transform_1, window_bounds = array<i64: 3, 32>}, {pipeline_mode = #tpu.pipeline_mode<synchronous>, transform_indices = @transform_2, window_bounds = array<i64: 1, 32>}, {transform_indices = @transform_3, window_bounds = array<i64: 32, 32>}]} {
    %c0 = arith.constant 0 : index
    %c0_0 = arith.constant 0 : index
    %0 = vector.load %arg1[%c0, %c0_0] : memref<32x3xf32, #tpu.memory_space<vmem>>, vector<32x3xf32>
    %c0_1 = arith.constant 0 : index
    %c0_2 = arith.constant 0 : index
    %1 = vector.load %arg2[%c0_1, %c0_2] : memref<3x32xf32, #tpu.memory_space<vmem>>, vector<3x32xf32>
    %cst = arith.constant dense<0.000000e+00> : vector<32x32xf32>
    %2 = tpu.matmul %0, %1, %cst {dimension_numbers = #tpu.dot_dimension_numbers<[1], [0], [0], [1], [0, 0, 1, 1], [], []>} : vector<32x3xf32>, vector<3x32xf32>, vector<32x32xf32> -> vector<32x32xf32>
    %c0_3 = arith.constant 0 : index
    %c0_4 = arith.constant 0 : index
    %3 = vector.load %arg3[%c0_3, %c0_4] : memref<1x32xf32, #tpu.memory_space<vmem>>, vector<1x32xf32>
    %4 = vector.broadcast %3 : vector<1x32xf32> to vector<32x32xf32>
    %5 = arith.addf %2, %4 : vector<32x32xf32>
    %c0_5 = arith.constant 0 : index
    %c0_6 = arith.constant 0 : index
    %6 = vector.load %arg4[%c0_5, %c0_6] : memref<32x32xf32, #tpu.memory_space<vmem>>, vector<32x32xf32>
    tpu.vector_store %arg4[%c0_5, %c0_6], %5 {strides = array<i32>} : memref<32x32xf32, #tpu.memory_space<vmem>>, vector<32x32xf32>,
    return
  }
  func.func @transform_0(%arg0: i32) -> (i32, i32) {
    %c0_i32 = arith.constant 0 : i32
    %c0_i32_0 = arith.constant 0 : i32
    return %arg0, %c0_i32 : i32, i32
  }
  func.func @transform_1(%arg0: i32) -> (i32, i32) {
    %c0_i32 = arith.constant 0 : i32
    %c0_i32_0 = arith.constant 0 : i32
    %c0_i32_1 = arith.constant 0 : i32
    return %c0_i32, %c0_i32_0 : i32, i32
  }
  func.func @transform_2(%arg0: i32) -> (i32, i32) {
    %c0_i32 = arith.constant 0 : i32
    %c0_i32_0 = arith.constant 0 : i32
    %c0_i32_1 = arith.constant 0 : i32
    return %c0_i32, %c0_i32_0 : i32, i32
  }
  func.func @transform_3(%arg0: i32) -> (i32, i32) {
    %c0_i32 = arith.constant 0 : i32
    %c0_i32_0 = arith.constant 0 : i32
    return %arg0, %c0_i32 : i32, i32
  }
}

</mosaic_0001>

<bundles_post_ra>
// kernel: positional_encoding.1
= control target key start
LH: loop header
LB: loop body
LE: loop exit
PB: predicated region body
PF: predicated region fallthrough
CT: control target
= control target key end

     0   :  { %vm40_vm0 = vcmask 1042432   ;;  %vm27_vm1 = vcmask 23552   ;;  %s240_s0 = inlined_call_operand.vmem [shape: f32[32,3], index: 0, kind: input, shape index: {}]   ;;  %s241_s1 = inlined_call_operand.vmem [shape: f32[3,32], index: 1, kind: input, shape index: {}]   ;;  %s242_s2 = inlined_call_operand.vmem [shape: f32[1,32], index: 2, kind: input, shape index: {}]   ;;  %s243_s3 = inlined_call_operand.hbm [shape: f32[32,32], index: 3, kind: output, shape index: {}]  }
   0x1   :  { %v19_v0 = vld [vmem:[%s241_s1] sm:$0x7]  ;;  %v17_v2 = vld [vmem:[%s240_s0 + $0x10] sm:$0xff]  ;;  %v16_v3 = vld [vmem:[%s240_s0 + $0x8] sm:$0xff] }
   0x2   :  { %v15_v1 = vld [vmem:[%s240_s0] sm:$0xff]  ;;  %161 = vmatprep.subr.msk.mxu0 %vm40_vm0, %v19_v0  ;;  %169 = vmatprep.subr.msk.mxu1 %vm40_vm0, %v19_v0  ;;  %v18_v4 = vld [vmem:[%s240_s0 + $0x18] sm:$0xff] }
   0x3   :  { %8 = vsyncpa [#allocation3], 0  ;;  %162 = vmatpush3.msk.msra.mxu0 %vm40_vm0, %v19_v0  ;;  %170 = vmatpush3.msk.msra.mxu1 %vm40_vm0, %v19_v0  ;;  %v150_v5 = vld [vmem:[%s242_s2] ss:$0 sm:$0xff]  ;;  %s196_s23 = smov [#allocation2]   ;;  %vm129_vm2 = vcmask 261120  }
   0x4   :  { %163 = vmatprep.mubr.msk.f32.mxu0 %vm27_vm1, %v15_v1  ;;  %166 = vmatprep.mubr.msk.f32.mxu1 %vm27_vm1, %v17_v2  ;;  %s139_s24 = sshll.u32 %s196_s23, 4  ;;  %s140_s24 = int_to_ptr.vmem [resolvable:$true] %s139_s24 }
   0x5   :  { %164 = vmatmul.mubr.msk.f32.vlgmr.msra.gmra.mxu0 %vm27_vm1, %v16_v3  ;;  %167 = vmatmul.mubr.msk.f32.vlgmr.msra.gmra.mxu1 %vm27_vm1, %v18_v4  ;;  %s174_s0 = scalar_lea.vmem %s140_s24, 512  ;;  %p179_p1 = scmp.lt.s32.totalorder %s140_s24, %s140_s24 }
   0x6   :  { %p175_p0 = scmp.ne.s32.totalorder %s140_s24, %s174_s0  ;;  %p180_p2 = scmp.lt.s32.totalorder %s174_s0, %s174_s0 }
   0x8   :  { %p181_p3 = por %p180_p2, %p179_p1 }
   0xa   :  { %p182_p4 = pnand %p181_p3, %p175_p0 }
  0xc5   :  { %v165_v6 = vpop.f32.mrf.mxu0  ;;  %v168_v7 = vpop.f32.mrf.mxu1 }
  0xc6   :  { %v116_v8 = vadd.f32 %v165_v6, %v150_v5  ;;  %v126_v9 = vadd.f32 %v168_v7, %v150_v5 }
  0xc7   :  { %v110_v10 = vpop.f32.mrf.mxu0  ;;  %v120_v11 = vpop.f32.mrf.mxu1 }
  0xc8   :  { %131 = vst.msk [vmem:[#allocation2 + $0x8] sm:$0xff] %vm129_vm2, %v116_v8  ;;  %133 = vst.msk [vmem:[#allocation2 + $0x18] sm:$0xff] %vm129_vm2, %v126_v9  ;;  %v111_v12 = vadd.f32 %v150_v5, %v110_v10  ;;  %v121_v13 = vadd.f32 %v150_v5, %v120_v11 }
  0xca   :  { %130 = vst.msk [vmem:[#allocation2] sm:$0xff] %vm129_vm2, %v111_v12  ;;  %132 = vst.msk [vmem:[#allocation2 + $0x10] sm:$0xff] %vm129_vm2, %v121_v13 }
  0xcb   :  { %185 = shalt.err (!%p182_p4)
}
  0xcc   :  { %s197_s2 = smov 128   ;;  %s198_s25 = smov 8  }
  0xcd   :  { %145 = dma.vmem_to_hbm [thread:$0]  %s140_s24, 512, %s243_s3, [#allocation3], %s197_s2, %s197_s2, %s198_s25  }
  0xce   :  { %194 = dma.done.wait [#allocation3], 512  }
  0xcf   :  { %195 = vsyncadd [#allocation3], 4294966784 }
  0xd0   :  { %149 = vsyncpa [#allocation3], 1 }

</bundles_post_ra>
